<compile_context>
chip_gen: v7x
topology: tpu7x:2x2x1
jax: 0.10.0
libtpu: 0.0.40
codegen_flags: <defaults>
</compile_context>

<pallas_src>
import numpy as np
import jax
import jax.numpy as jnp
from jax import lax
from jax.experimental import pallas as pl
from jax.experimental.pallas import tpu as pltpu


def _vmem_limit_bytes():
    # ~75% of per-core VMEM: ~48 MiB on v7x (64 MiB), ~96 MiB on v5e/v6e (128 MiB).
    try:
        cap = int(pltpu.get_tpu_info().vmem_capacity_bytes)
        return max(32 * 1024 * 1024, min(cap * 3 // 4, 112 * 1024 * 1024))
    except Exception:
        return 48 * 1024 * 1024


def _build_attn_kernel(S, D, NQ, NKV, HD, TB):
    """Fused RMSNorm -> QKV -> RoPE -> GQA causal attention -> out-proj -> +residual."""
    HD2 = HD // 2
    R = TB * S                       # rows per block: batch folded into the matmul M dim
    WQ2 = NQ * HD2
    WK2 = NKV * HD2
    f32, bf16 = jnp.float32, jnp.bfloat16

    def kernel(inv1_ref, x_ref, wn1_ref, cq_ref, sq_ref, ck_ref, sk_ref, bias_ref,
               qw_ref, qb_ref, kw_ref, kb_ref, vw_ref, vb_ref, ow_ref, ob_ref,
               h1_ref, ssq_ref):
        x = x_ref[...]                                        # (R, D) f32
        xn = (wn1_ref[...] * x) * inv1_ref[0, 0]              # global RMSNorm (denom in SMEM)
        xb = xn.astype(bf16)

        # QKV projections on the full (R, D) block: bf16 operands, f32 MXU accumulation.
        q = jnp.dot(xb, qw_ref[...], preferred_element_type=f32) + qb_ref[...]   # (R, 2*WQ2)
        k = jnp.dot(xb, kw_ref[...], preferred_element_type=f32) + kb_ref[...]   # (R, 2*WK2)
        v = jnp.dot(xb, vw_ref[...], preferred_element_type=f32) + vb_ref[...]   # (R, NKV*HD)

        # Full-slab RoPE in the wrapper-folded [all-even | all-odd] column layout: pure
        # elementwise f32 math on the two half-slabs, no per-head loop, no swap/roll/concat.
        cq, sq = cq_ref[...], sq_ref[...]                     # (R, WQ2); 1/sqrt(HD) pre-folded
        ck, sk = ck_ref[...], sk_ref[...]                     # (R, WK2)
        qE, qO = q[:, :WQ2], q[:, WQ2:]
        kE, kO = k[:, :WK2], k[:, WK2:]
        rqE = (qE * cq - qO * sq).astype(bf16)
        rqO = (qO * cq + qE * sq).astype(bf16)
        rkE = (kE * ck - kO * sk).astype(bf16)
        rkO = (kO * ck + kE * sk).astype(bf16)
        v16 = v.astype(bf16)

        bias = bias_ref[...]                                  # (R, R) causal + batch-block mask
        acc = x + ob_ref[...]                                 # residual + out-proj bias, f32

        # Per q-head scores / softmax / PV, with the output projection accumulated per head
        # (no lane reassembly of a (R, NQ*HD) attention-output slab).
        for p in range(NQ):
            g = p % NKV                                       # GQA: q head p uses kv head p%NKV
            s = lax.dot_general(rqE[:, p * HD2:(p + 1) * HD2],
                                rkE[:, g * HD2:(g + 1) * HD2],
                                (((1,), (1,)), ((), ())), preferred_element_type=f32)
            s = s + lax.dot_general(rqO[:, p * HD2:(p + 1) * HD2],
                                    rkO[:, g * HD2:(g + 1) * HD2],
                                    (((1,), (1,)), ((), ())), preferred_element_type=f32)
            s = s + bias
            m = jnp.max(s, axis=-1, keepdims=True)
            e = jnp.exp(s - m)
            pr = e * pl.reciprocal(jnp.sum(e, axis=-1, keepdims=True), approx=True)
            og = jnp.dot(pr.astype(bf16), v16[:, g * HD:(g + 1) * HD],
                         preferred_element_type=f32)          # (R, HD)
            acc = acc + jnp.dot(og.astype(bf16), ow_ref[p * HD:(p + 1) * HD, :],
                                preferred_element_type=f32)

        h1_ref[...] = acc
        # Per-block sum-of-squares of h1 for the second (global) RMSNorm: avoids an extra
        # full HBM read pass over h1 between the two pallas_calls.
        ss = jnp.sum(acc * acc, axis=0, keepdims=True)        # (1, D)
        ssq_ref[...] = jnp.sum(ss, axis=1, keepdims=True)     # (1, 1)

    return kernel


def _ffn_kernel(inv2_ref, h1_ref, wn2_ref, w1_ref, b1_ref, w2_ref, b2_ref, y_ref):
    f32, bf16 = jnp.float32, jnp.bfloat16
    h1 = h1_ref[...]                                          # (R, D)
    hn = (wn2_ref[...] * h1) * inv2_ref[0, 0]                 # global RMSNorm (precomputed denom)
    f = jnp.dot(hn.astype(bf16), w1_ref[...], preferred_element_type=f32) + b1_ref[...]
    f = f * jax.nn.sigmoid(f)                                 # SiLU in f32 (VPU/EUP)
    f = jnp.dot(f.astype(bf16), w2_ref[...], preferred_element_type=f32) + b2_ref[...]
    y_ref[...] = h1 + f                                       # residual


def _nbytes(*arrs):
    return int(sum(int(np.prod(a.shape)) * a.dtype.itemsize for a in arrs))


def transformer_layer_forward(x, freqs_cis, params, n_q_heads, n_kv_heads):
    B, S, D = x.shape
    NQ, NKV = n_q_heads, n_kv_heads
    HD = D // NQ
    HD2 = HD // 2
    HIDE = params["w1"].shape[1]
    f32, bf16 = jnp.float32, jnp.bfloat16
    assert D % NQ == 0 and NQ % NKV == 0 and HD % 2 == 0

    # Fold as many whole sequences as possible into one block (matmul M = TB*S rows).
    TB = 1
    for c in range(1, B + 1):
        if B % c == 0 and c * S <= 512:
            TB = c
    NB = B // TB
    R = TB * S

    # --- wrapper-side layout folding (zero kernel cost) -------------------------------------
    # Q/K projection columns -> global [all even features | all odd features] layout (head-major
    # inside each half).  Q and K are permuted identically inside each head, so QK^T per head is
    # unchanged; V and the output projection are untouched.
    e_q = np.concatenate([h * HD + 2 * np.arange(HD2) for h in range(NQ)])
    q_perm = np.concatenate([e_q, e_q + 1])
    e_k = np.concatenate([g * HD + 2 * np.arange(HD2) for g in range(NKV)])
    k_perm = np.concatenate([e_k, e_k + 1])

    qw = params["qw"][:, q_perm].astype(bf16)
    qb = params["qb"][:, q_perm].astype(f32)
    kw = params["kw"][:, k_perm].astype(bf16)
    kb = params["kb"][:, k_perm].astype(f32)
    vw = params["vw"].astype(bf16)
    vb = params["vb"].astype(f32)
    ow = params["ow"].astype(bf16)
    ob = params["ob"].astype(f32)
    w1 = params["w1"].astype(bf16)
    b1 = params["b1"].astype(f32)
    w2 = params["w2"].astype(bf16)
    b2 = params["b2"].astype(f32)
    wn1 = params["wn1"].astype(f32)
    wn2 = params["wn2"].astype(f32)

    # RoPE half-tables, row-tiled to the (TB*S) block rows; 1/sqrt(HD) folded into the Q tables.
    inv_dk = 1.0 / (HD ** 0.5)
    cos = jnp.real(freqs_cis)[:S].astype(f32)                 # (S, HD2)
    sin = jnp.imag(freqs_cis)[:S].astype(f32)
    cq = jnp.tile(jnp.tile(cos, (1, NQ)) * inv_dk, (TB, 1))   # (R, NQ*HD2)
    sq = jnp.tile(jnp.tile(sin, (1, NQ)) * inv_dk, (TB, 1))
    ck = jnp.tile(jnp.tile(cos, (1, NKV)), (TB, 1))           # (R, NKV*HD2)
    sk = jnp.tile(jnp.tile(sin, (1, NKV)), (TB, 1))

    # Additive causal + batch-block-diagonal mask for the (R, R) per-head score matrix
    # (batch folded into rows -> cross-batch entries masked).  Precomputed once.
    rows = np.arange(R)
    valid = ((rows[:, None] // S) == (rows[None, :] // S)) & \
            ((rows[None, :] % S) <= (rows[:, None] % S))
    bias = jnp.asarray(np.where(valid, 0.0, -1e30), dtype=f32)

    x2 = x.reshape(B * S, D).astype(f32)

    # Global RMSNorm denominator of the input (spans all grid blocks) -- see TODO above.
    inv1 = (1.0 / (jnp.sqrt(jnp.sum(x2 * x2)) + 1e-6)).reshape(1, 1).astype(f32)

    cparams = pltpu.CompilerParams(dimension_semantics=("parallel",),
                                   vmem_limit_bytes=_vmem_limit_bytes())

    smem = pl.BlockSpec(memory_space=pltpu.MemorySpace.SMEM)
    rowblk = pl.BlockSpec((R, D), lambda b: (b, 0))
    resident = lambda shape: pl.BlockSpec(shape, lambda b: (0,) * len(shape))

    attn_kernel = _build_attn_kernel(S, D, NQ, NKV, HD, TB)
    attn_inputs = (inv1, x2, wn1, cq, sq, ck, sk, bias,
                   qw, qb, kw, kb, vw, vb, ow, ob)
    attn_cost = pl.CostEstimate(
        flops=int(2 * B * S * D * (NQ * HD + 2 * NKV * HD + D) + 4 * B * NQ * S * R * HD),
        transcendentals=int(B * NQ * S * R),
        bytes_accessed=_nbytes(*attn_inputs) + 2 * B * S * D * 4)
    h1, ssq = pl.pallas_call(
        attn_kernel,
        out_shape=(jax.ShapeDtypeStruct((B * S, D), f32),
                   jax.ShapeDtypeStruct((NB, 1), f32)),
        grid=(NB,),
        in_specs=[smem, rowblk,
                  resident((1, D)),
                  resident((R, NQ * HD2)), resident((R, NQ * HD2)),
                  resident((R, NKV * HD2)), resident((R, NKV * HD2)),
                  resident((R, R)),
                  resident((D, NQ * HD)), resident((1, NQ * HD)),
                  resident((D, NKV * HD)), resident((1, NKV * HD)),
                  resident((D, NKV * HD)), resident((1, NKV * HD)),
                  resident((D, D)), resident((1, D))],
        out_specs=(rowblk, pl.BlockSpec((1, 1), lambda b: (b, 0))),
        compiler_params=cparams,
        cost_estimate=attn_cost,
    )(*attn_inputs)

    # Second global RMSNorm denominator from the per-block partial sums (no h1 re-read).
    inv2 = (1.0 / (jnp.sqrt(jnp.sum(ssq)) + 1e-6)).reshape(1, 1).astype(f32)

    ffn_inputs = (inv2, h1, wn2, w1, b1, w2, b2)
    ffn_cost = pl.CostEstimate(
        flops=int(4 * B * S * D * HIDE),
        transcendentals=int(B * S * HIDE),
        bytes_accessed=_nbytes(*ffn_inputs) + B * S * D * 4)
    y = pl.pallas_call(
        _ffn_kernel,
        out_shape=jax.ShapeDtypeStruct((B * S, D), f32),
        grid=(NB,),
        in_specs=[smem, rowblk,
                  resident((1, D)),
                  resident((D, HIDE)), resident((1, HIDE)),
                  resident((HIDE, D)), resident((1, D))],
        out_specs=rowblk,
        input_output_aliases={1: 0},           # y overwrites h1's HBM buffer
        compiler_params=cparams,
        cost_estimate=ffn_cost,
    )(*ffn_inputs)
    return y.reshape(B, S, D)


def init_params(key, D, NQ, NKV, HIDE):
    HD = D // NQ
    ks = jax.random.split(key, 14)

    def w(k, shape, scale=0.1):
        return (scale * jax.random.normal(k, shape)).astype(jnp.float32)

    return {
        "wn1": jax.random.normal(ks[0], (1, D), jnp.float32),
        "wn2": jax.random.normal(ks[1], (1, D), jnp.float32),
        "qw": w(ks[2], (D, NQ * HD)), "qb": w(ks[3], (1, NQ * HD)),
        "kw": w(ks[4], (D, NKV * HD)), "kb": w(ks[5], (1, NKV * HD)),
        "vw": w(ks[6], (D, NKV * HD)), "vb": w(ks[7], (1, NKV * HD)),
        "ow": w(ks[8], (D, D)), "ob": w(ks[9], (1, D)),
        "w1": w(ks[10], (D, HIDE)), "b1": w(ks[11], (1, HIDE)),
        "w2": w(ks[12], (HIDE, D)), "b2": w(ks[13], (1, D)),
    }


def ref_forward(x, freqs_cis, params, NQ, NKV):
    """Pure-JAX replica of the PyTorch forward (for verification)."""
    B, S, D = x.shape
    HD = D // NQ
    GROUP = NQ // NKV
    hp = lax.Precision.HIGHEST
    cos = jnp.real(freqs_cis)
    sin = jnp.imag(freqs_cis)

    def rmsnorm(t, wn):
        return wn * t / (jnp.sqrt(jnp.sum(t ** 2)) + 1e-6)

    def rope(t):                                               # (B, S, H, HD)
        a, b = t[..., 0::2], t[..., 1::2]
        c, s = cos[None, :, None, :], sin[None, :, None, :]
        out = jnp.stack([a * c - b * s, a * s + b * c], axis=-1)
        return out.reshape(t.shape)

    xn = rmsnorm(x, params["wn1"])
    q = (jnp.matmul(xn, params["qw"], precision=hp) + params["qb"]).reshape(B, S, NQ, HD)
    k = (jnp.matmul(xn, params["kw"], precision=hp) + params["kb"]).reshape(B, S, NKV, HD)
    v = (jnp.matmul(xn, params["vw"], precision=hp) + params["vb"]).reshape(B, S, NKV, HD)
    q, k = rope(q), rope(k)
    q = q.transpose(0, 2, 1, 3)
    k = jnp.tile(k.transpose(0, 2, 1, 3), (1, GROUP, 1, 1))    # kv head = i % NKV
    v = jnp.tile(v.transpose(0, 2, 1, 3), (1, GROUP, 1, 1))
    scores = jnp.einsum("bhqd,bhkd->bhqk", q, k, precision=hp) / (HD ** 0.5)
    mask = jnp.where(jnp.triu(jnp.ones((S, S)), 1) == 1, -jnp.inf, 0.0)
    p = jax.nn.softmax(scores + mask, axis=-1)
    o = jnp.einsum("bhqk,bhkd->bhqd", p, v, precision=hp)
    o = o.transpose(0, 2, 1, 3).reshape(B, S, NQ * HD)
    att = jnp.matmul(o, params["ow"], precision=hp) + params["ob"]
    h1 = x + att
    hn = rmsnorm(h1, params["wn2"])
    f = jnp.matmul(hn, params["w1"], precision=hp) + params["b1"]
    f = f * jax.nn.sigmoid(f)
    f = jnp.matmul(f, params["w2"], precision=hp) + params["b2"]
    return f + h1


if __name__ == "__main__":
    B, S, D = 2, 8, 32          # batch, seq, input_dim
    NQ, NKV, HIDE = 4, 2, 64    # n_q_heads, n_kv_heads, hide_dim
    HD = D // NQ

    key = jax.random.PRNGKey(0)
    kx, kp = jax.random.split(key)
    x = jax.random.normal(kx, (B, S, D), jnp.float32)
    params = init_params(kp, D, NQ, NKV, HIDE)

    # freqs_cis: complex (S, HD//2), llama-style
    inv_freq = 1.0 / (10000.0 ** (jnp.arange(0, HD, 2, dtype=jnp.float32) / HD))
    ang = jnp.arange(S, dtype=jnp.float32)[:, None] * inv_freq[None, :]
    freqs_cis = jnp.cos(ang) + 1j * jnp.sin(ang)

    out = transformer_layer_forward(x, freqs_cis, params, NQ, NKV)
    out = jax.block_until_ready(out)

    ref = ref_forward(x, freqs_cis, params, NQ, NKV)
    np.testing.assert_allclose(np.asarray(out), np.asarray(ref), rtol=2e-2, atol=2e-2)
    print("KERNEL_OK")
</pallas_src>

<mosaic_0001>
module attributes {stable_mosaic.version = 11 : i64} {
  func.func @kernel(%arg0: i32, %arg1: memref<1x1xf32, #tpu.memory_space<smem>>, %arg2: memref<16x32xf32, #tpu.memory_space<vmem>>, %arg3: memref<1x32xf32, #tpu.memory_space<vmem>>, %arg4: memref<16x16xf32, #tpu.memory_space<vmem>>, %arg5: memref<16x16xf32, #tpu.memory_space<vmem>>, %arg6: memref<16x8xf32, #tpu.memory_space<vmem>>, %arg7: memref<16x8xf32, #tpu.memory_space<vmem>>, %arg8: memref<16x16xf32, #tpu.memory_space<vmem>>, %arg9: memref<32x32xbf16, #tpu.memory_space<vmem>>, %arg10: memref<1x32xf32, #tpu.memory_space<vmem>>, %arg11: memref<32x16xbf16, #tpu.memory_space<vmem>>, %arg12: memref<1x16xf32, #tpu.memory_space<vmem>>, %arg13: memref<32x16xbf16, #tpu.memory_space<vmem>>, %arg14: memref<1x16xf32, #tpu.memory_space<vmem>>, %arg15: memref<32x32xbf16, #tpu.memory_space<vmem>>, %arg16: memref<1x32xf32, #tpu.memory_space<vmem>>, %arg17: memref<16x32xf32, #tpu.memory_space<vmem>>, %arg18: memref<1x1xf32, #tpu.memory_space<vmem>>) attributes {dimension_semantics = [#tpu.dimension_semantics<parallel>], iteration_bounds = array<i64: 1>, scalar_prefetch = 0 : i64, scratch_operands = 0 : i64, tpu.core_type = #tpu.core_type<tc>, window_params = [{transform_indices = @transform_0, window_bounds = array<i64: 1, 1>}, {transform_indices = @transform_1, window_bounds = array<i64: 16, 32>}, {pipeline_mode = #tpu.pipeline_mode<synchronous>, transform_indices = @transform_2, window_bounds = array<i64: 1, 32>}, {pipeline_mode = #tpu.pipeline_mode<synchronous>, transform_indices = @transform_3, window_bounds = array<i64: 16, 16>}, {pipeline_mode = #tpu.pipeline_mode<synchronous>, transform_indices = @transform_4, window_bounds = array<i64: 16, 16>}, {pipeline_mode = #tpu.pipeline_mode<synchronous>, transform_indices = @transform_5, window_bounds = array<i64: 16, 8>}, {pipeline_mode = #tpu.pipeline_mode<synchronous>, transform_indices = @transform_6, window_bounds = array<i64: 16, 8>}, {pipeline_mode = #tpu.pipeline_mode<synchronous>, transform_indices = @transform_7, window_bounds = array<i64: 16, 16>}, {pipeline_mode = #tpu.pipeline_mode<synchronous>, transform_indices = @transform_8, window_bounds = array<i64: 32, 32>}, {pipeline_mode = #tpu.pipeline_mode<synchronous>, transform_indices = @transform_9, window_bounds = array<i64: 1, 32>}, {pipeline_mode = #tpu.pipeline_mode<synchronous>, transform_indices = @transform_10, window_bounds = array<i64: 32, 16>}, {pipeline_mode = #tpu.pipeline_mode<synchronous>, transform_indices = @transform_11, window_bounds = array<i64: 1, 16>}, {pipeline_mode = #tpu.pipeline_mode<synchronous>, transform_indices = @transform_12, window_bounds = array<i64: 32, 16>}, {pipeline_mode = #tpu.pipeline_mode<synchronous>, transform_indices = @transform_13, window_bounds = array<i64: 1, 16>}, {pipeline_mode = #tpu.pipeline_mode<synchronous>, transform_indices = @transform_14, window_bounds = array<i64: 32, 32>}, {pipeline_mode = #tpu.pipeline_mode<synchronous>, transform_indices = @transform_15, window_bounds = array<i64: 1, 32>}, {transform_indices = @transform_16, window_bounds = array<i64: 16, 32>}, {transform_indices = @transform_17, window_bounds = array<i64: 1, 1>}]} {
    %c0 = arith.constant 0 : index
    %c0_0 = arith.constant 0 : index
    %0 = vector.load %arg2[%c0, %c0_0] : memref<16x32xf32, #tpu.memory_space<vmem>>, vector<16x32xf32>
    %c0_1 = arith.constant 0 : index
    %c0_2 = arith.constant 0 : index
    %1 = vector.load %arg3[%c0_1, %c0_2] : memref<1x32xf32, #tpu.memory_space<vmem>>, vector<1x32xf32>
    %2 = vector.broadcast %1 : vector<1x32xf32> to vector<16x32xf32>
    %3 = arith.mulf %2, %0 : vector<16x32xf32>
    %c0_3 = arith.constant 0 : index
    %c0_4 = arith.constant 0 : index
    %4 = memref.load %arg1[%c0_3, %c0_4] : memref<1x1xf32, #tpu.memory_space<smem>>
    %5 = vector.broadcast %4 : f32 to vector<16x32xf32>
    %6 = arith.mulf %3, %5 : vector<16x32xf32>
    %7 = arith.truncf %6 : vector<16x32xf32> to vector<16x32xbf16>
    %c0_5 = arith.constant 0 : index
    %c0_6 = arith.constant 0 : index
    %8 = vector.load %arg9[%c0_5, %c0_6] : memref<32x32xbf16, #tpu.memory_space<vmem>>, vector<32x32xbf16>
    %cst = arith.constant dense<0.000000e+00> : vector<16x32xf32>
    %9 = tpu.matmul %7, %8, %cst {dimension_numbers = #tpu.dot_dimension_numbers<[1], [0], [0], [1], [0, 0, 1, 1], [], []>} : vector<16x32xbf16>, vector<32x32xbf16>, vector<16x32xf32> -> vector<16x32xf32>
    %c0_7 = arith.constant 0 : index
    %c0_8 = arith.constant 0 : index
    %10 = vector.load %arg10[%c0_7, %c0_8] : memref<1x32xf32, #tpu.memory_space<vmem>>, vector<1x32xf32>
    %11 = vector.broadcast %10 : vector<1x32xf32> to vector<16x32xf32>
    %12 = arith.addf %9, %11 : vector<16x32xf32>
    %c0_9 = arith.constant 0 : index
    %c0_10 = arith.constant 0 : index
    %13 = vector.load %arg11[%c0_9, %c0_10] : memref<32x16xbf16, #tpu.memory_space<vmem>>, vector<32x16xbf16>
    %cst_11 = arith.constant dense<0.000000e+00> : vector<16x16xf32>
    %14 = tpu.matmul %7, %13, %cst_11 {dimension_numbers = #tpu.dot_dimension_numbers<[1], [0], [0], [1], [0, 0, 1, 1], [], []>} : vector<16x32xbf16>, vector<32x16xbf16>, vector<16x16xf32> -> vector<16x16xf32>
    %c0_12 = arith.constant 0 : index
    %c0_13 = arith.constant 0 : index
    %15 = vector.load %arg12[%c0_12, %c0_13] : memref<1x16xf32, #tpu.memory_space<vmem>>, vector<1x16xf32>
    %16 = vector.broadcast %15 : vector<1x16xf32> to vector<16x16xf32>
    %17 = arith.addf %14, %16 : vector<16x16xf32>
    %c0_14 = arith.constant 0 : index
    %c0_15 = arith.constant 0 : index
    %18 = vector.load %arg13[%c0_14, %c0_15] : memref<32x16xbf16, #tpu.memory_space<vmem>>, vector<32x16xbf16>
    %cst_16 = arith.constant dense<0.000000e+00> : vector<16x16xf32>
    %19 = tpu.matmul %7, %18, %cst_16 {dimension_numbers = #tpu.dot_dimension_numbers<[1], [0], [0], [1], [0, 0, 1, 1], [], []>} : vector<16x32xbf16>, vector<32x16xbf16>, vector<16x16xf32> -> vector<16x16xf32>
    %c0_17 = arith.constant 0 : index
    %c0_18 = arith.constant 0 : index
    %20 = vector.load %arg14[%c0_17, %c0_18] : memref<1x16xf32, #tpu.memory_space<vmem>>, vector<1x16xf32>
    %21 = vector.broadcast %20 : vector<1x16xf32> to vector<16x16xf32>
    %22 = arith.addf %19, %21 : vector<16x16xf32>
    %c0_19 = arith.constant 0 : index
    %c0_20 = arith.constant 0 : index
    %23 = vector.load %arg4[%c0_19, %c0_20] : memref<16x16xf32, #tpu.memory_space<vmem>>, vector<16x16xf32>
    %c0_21 = arith.constant 0 : index
    %c0_22 = arith.constant 0 : index
    %24 = vector.load %arg5[%c0_21, %c0_22] : memref<16x16xf32, #tpu.memory_space<vmem>>, vector<16x16xf32>
    %c0_23 = arith.constant 0 : index
    %c0_24 = arith.constant 0 : index
    %25 = vector.load %arg6[%c0_23, %c0_24] : memref<16x8xf32, #tpu.memory_space<vmem>>, vector<16x8xf32>
    %c0_25 = arith.constant 0 : index
    %c0_26 = arith.constant 0 : index
    %26 = vector.load %arg7[%c0_25, %c0_26] : memref<16x8xf32, #tpu.memory_space<vmem>>, vector<16x8xf32>
    %27 = vector.extract_strided_slice %12 {offsets = [0, 0], sizes = [16, 16], strides = [1, 1]} : vector<16x32xf32> to vector<16x16xf32>
    %28 = vector.extract_strided_slice %12 {offsets = [0, 16], sizes = [16, 16], strides = [1, 1]} : vector<16x32xf32> to vector<16x16xf32>
    %29 = vector.extract_strided_slice %17 {offsets = [0, 0], sizes = [16, 8], strides = [1, 1]} : vector<16x16xf32> to vector<16x8xf32>
    %30 = vector.extract_strided_slice %17 {offsets = [0, 8], sizes = [16, 8], strides = [1, 1]} : vector<16x16xf32> to vector<16x8xf32>
    %31 = arith.mulf %27, %23 : vector<16x16xf32>
    %32 = arith.mulf %28, %24 : vector<16x16xf32>
    %33 = arith.subf %31, %32 : vector<16x16xf32>
    %34 = arith.truncf %33 : vector<16x16xf32> to vector<16x16xbf16>
    %35 = arith.mulf %28, %23 : vector<16x16xf32>
    %36 = arith.mulf %27, %24 : vector<16x16xf32>
    %37 = arith.addf %35, %36 : vector<16x16xf32>
    %38 = arith.truncf %37 : vector<16x16xf32> to vector<16x16xbf16>
    %39 = arith.mulf %29, %25 : vector<16x8xf32>
    %40 = arith.mulf %30, %26 : vector<16x8xf32>
    %41 = arith.subf %39, %40 : vector<16x8xf32>
    %42 = arith.truncf %41 : vector<16x8xf32> to vector<16x8xbf16>
    %43 = arith.mulf %30, %25 : vector<16x8xf32>
    %44 = arith.mulf %29, %26 : vector<16x8xf32>
    %45 = arith.addf %43, %44 : vector<16x8xf32>
    %46 = arith.truncf %45 : vector<16x8xf32> to vector<16x8xbf16>
    %47 = arith.truncf %22 : vector<16x16xf32> to vector<16x16xbf16>
    %c0_27 = arith.constant 0 : index
    %c0_28 = arith.constant 0 : index
    %48 = vector.load %arg8[%c0_27, %c0_28] : memref<16x16xf32, #tpu.memory_space<vmem>>, vector<16x16xf32>
    %c0_29 = arith.constant 0 : index
    %c0_30 = arith.constant 0 : index
    %49 = vector.load %arg16[%c0_29, %c0_30] : memref<1x32xf32, #tpu.memory_space<vmem>>, vector<1x32xf32>
    %50 = vector.broadcast %49 : vector<1x32xf32> to vector<16x32xf32>
    %51 = arith.addf %0, %50 : vector<16x32xf32>
    %52 = vector.extract_strided_slice %34 {offsets = [0, 0], sizes = [16, 4], strides = [1, 1]} : vector<16x16xbf16> to vector<16x4xbf16>
    %53 = vector.extract_strided_slice %42 {offsets = [0, 0], sizes = [16, 4], strides = [1, 1]} : vector<16x8xbf16> to vector<16x4xbf16>
    %cst_31 = arith.constant dense<0.000000e+00> : vector<16x16xf32>
    %54 = tpu.matmul %52, %53, %cst_31 {dimension_numbers = #tpu.dot_dimension_numbers<[1], [1], [0], [0], [0, 0, 1, 0], [], []>} : vector<16x4xbf16>, vector<16x4xbf16>, vector<16x16xf32> -> vector<16x16xf32>
    %55 = vector.extract_strided_slice %38 {offsets = [0, 0], sizes = [16, 4], strides = [1, 1]} : vector<16x16xbf16> to vector<16x4xbf16>
    %56 = vector.extract_strided_slice %46 {offsets = [0, 0], sizes = [16, 4], strides = [1, 1]} : vector<16x8xbf16> to vector<16x4xbf16>
    %cst_32 = arith.constant dense<0.000000e+00> : vector<16x16xf32>
    %57 = tpu.matmul %55, %56, %cst_32 {dimension_numbers = #tpu.dot_dimension_numbers<[1], [1], [0], [0], [0, 0, 1, 0], [], []>} : vector<16x4xbf16>, vector<16x4xbf16>, vector<16x16xf32> -> vector<16x16xf32>
    %58 = arith.addf %54, %57 : vector<16x16xf32>
    %59 = arith.addf %58, %48 : vector<16x16xf32>
    %cst_33 = arith.constant dense<0xFF800000> : vector<16xf32>
    %60 = vector.multi_reduction <maximumf>, %59, %cst_33 [1] : vector<16x16xf32> to vector<16xf32>
    %61 = vector.shape_cast %60 : vector<16xf32> to vector<16x1xf32>
    %62 = vector.broadcast %61 : vector<16x1xf32> to vector<16x16xf32>
    %63 = arith.subf %59, %62 : vector<16x16xf32>
    %64 = math.exp %63 : vector<16x16xf32>
    %cst_34 = arith.constant dense<0.000000e+00> : vector<16xf32>
    %65 = vector.multi_reduction <add>, %64, %cst_34 [1] : vector<16x16xf32> to vector<16xf32>
    %66 = vector.shape_cast %65 : vector<16xf32> to vector<16x1xf32>
    %67 = tpu.reciprocal %66 {approx = true} : vector<16x1xf32> -> vector<16x1xf32>
    %68 = vector.broadcast %67 : vector<16x1xf32> to vector<16x16xf32>
    %69 = arith.mulf %64, %68 : vector<16x16xf32>
    %70 = arith.truncf %69 : vector<16x16xf32> to vector<16x16xbf16>
    %71 = vector.extract_strided_slice %47 {offsets = [0, 0], sizes = [16, 8], strides = [1, 1]} : vector<16x16xbf16> to vector<16x8xbf16>
    %cst_35 = arith.constant dense<0.000000e+00> : vector<16x8xf32>
    %72 = tpu.matmul %70, %71, %cst_35 {dimension_numbers = #tpu.dot_dimension_numbers<[1], [0], [0], [1], [0, 0, 1, 1], [], []>} : vector<16x16xbf16>, vector<16x8xbf16>, vector<16x8xf32> -> vector<16x8xf32>
    %73 = arith.truncf %72 : vector<16x8xf32> to vector<16x8xbf16>
    %c0_36 = arith.constant 0 : index
    %c0_37 = arith.constant 0 : index
    %74 = vector.load %arg15[%c0_36, %c0_37] : memref<32x32xbf16, #tpu.memory_space<vmem>>, vector<8x32xbf16>
    %cst_38 = arith.constant dense<0.000000e+00> : vector<16x32xf32>
    %75 = tpu.matmul %73, %74, %cst_38 {dimension_numbers = #tpu.dot_dimension_numbers<[1], [0], [0], [1], [0, 0, 1, 1], [], []>} : vector<16x8xbf16>, vector<8x32xbf16>, vector<16x32xf32> -> vector<16x32xf32>
    %76 = arith.addf %51, %75 : vector<16x32xf32>
    %77 = vector.extract_strided_slice %34 {offsets = [0, 4], sizes = [16, 4], strides = [1, 1]} : vector<16x16xbf16> to vector<16x4xbf16>
    %78 = vector.extract_strided_slice %42 {offsets = [0, 4], sizes = [16, 4], strides = [1, 1]} : vector<16x8xbf16> to vector<16x4xbf16>
    %cst_39 = arith.constant dense<0.000000e+00> : vector<16x16xf32>
    %79 = tpu.matmul %77, %78, %cst_39 {dimension_numbers = #tpu.dot_dimension_numbers<[1], [1], [0], [0], [0, 0, 1, 0], [], []>} : vector<16x4xbf16>, vector<16x4xbf16>, vector<16x16xf32> -> vector<16x16xf32>
    %80 = vector.extract_strided_slice %38 {offsets = [0, 4], sizes = [16, 4], strides = [1, 1]} : vector<16x16xbf16> to vector<16x4xbf16>
    %81 = vector.extract_strided_slice %46 {offsets = [0, 4], sizes = [16, 4], strides = [1, 1]} : vector<16x8xbf16> to vector<16x4xbf16>
    %cst_40 = arith.constant dense<0.000000e+00> : vector<16x16xf32>
    %82 = tpu.matmul %80, %81, %cst_40 {dimension_numbers = #tpu.dot_dimension_numbers<[1], [1], [0], [0], [0, 0, 1, 0], [], []>} : vector<16x4xbf16>, vector<16x4xbf16>, vector<16x16xf32> -> vector<16x16xf32>
    %83 = arith.addf %79, %82 : vector<16x16xf32>
    %84 = arith.addf %83, %48 : vector<16x16xf32>
    %cst_41 = arith.constant dense<0xFF800000> : vector<16xf32>
    %85 = vector.multi_reduction <maximumf>, %84, %cst_41 [1] : vector<16x16xf32> to vector<16xf32>
    %86 = vector.shape_cast %85 : vector<16xf32> to vector<16x1xf32>
    %87 = vector.broadcast %86 : vector<16x1xf32> to vector<16x16xf32>
    %88 = arith.subf %84, %87 : vector<16x16xf32>
    %89 = math.exp %88 : vector<16x16xf32>
    %cst_42 = arith.constant dense<0.000000e+00> : vector<16xf32>
    %90 = vector.multi_reduction <add>, %89, %cst_42 [1] : vector<16x16xf32> to vector<16xf32>
    %91 = vector.shape_cast %90 : vector<16xf32> to vector<16x1xf32>
    %92 = tpu.reciprocal %91 {approx = true} : vector<16x1xf32> -> vector<16x1xf32>
    %93 = vector.broadcast %92 : vector<16x1xf32> to vector<16x16xf32>
    %94 = arith.mulf %89, %93 : vector<16x16xf32>
    %95 = arith.truncf %94 : vector<16x16xf32> to vector<16x16xbf16>
    %96 = vector.extract_strided_slice %47 {offsets = [0, 8], sizes = [16, 8], strides = [1, 1]} : vector<16x16xbf16> to vector<16x8xbf16>
    %cst_43 = arith.constant dense<0.000000e+00> : vector<16x8xf32>
    %97 = tpu.matmul %95, %96, %cst_43 {dimension_numbers = #tpu.dot_dimension_numbers<[1], [0], [0], [1], [0, 0, 1, 1], [], []>} : vector<16x16xbf16>, vector<16x8xbf16>, vector<16x8xf32> -> vector<16x8xf32>
    %98 = arith.truncf %97 : vector<16x8xf32> to vector<16x8xbf16>
    %c8 = arith.constant 8 : index
    %c0_44 = arith.constant 0 : index
    %99 = vector.load %arg15[%c8, %c0_44] : memref<32x32xbf16, #tpu.memory_space<vmem>>, vector<8x32xbf16>
    %cst_45 = arith.constant dense<0.000000e+00> : vector<16x32xf32>
    %100 = tpu.matmul %98, %99, %cst_45 {dimension_numbers = #tpu.dot_dimension_numbers<[1], [0], [0], [1], [0, 0, 1, 1], [], []>} : vector<16x8xbf16>, vector<8x32xbf16>, vector<16x32xf32> -> vector<16x32xf32>
    %101 = arith.addf %76, %100 : vector<16x32xf32>
    %102 = vector.extract_strided_slice %34 {offsets = [0, 8], sizes = [16, 4], strides = [1, 1]} : vector<16x16xbf16> to vector<16x4xbf16>
    %103 = vector.extract_strided_slice %42 {offsets = [0, 0], sizes = [16, 4], strides = [1, 1]} : vector<16x8xbf16> to vector<16x4xbf16>
    %cst_46 = arith.constant dense<0.000000e+00> : vector<16x16xf32>
    %104 = tpu.matmul %102, %103, %cst_46 {dimension_numbers = #tpu.dot_dimension_numbers<[1], [1], [0], [0], [0, 0, 1, 0], [], []>} : vector<16x4xbf16>, vector<16x4xbf16>, vector<16x16xf32> -> vector<16x16xf32>
    %105 = vector.extract_strided_slice %38 {offsets = [0, 8], sizes = [16, 4], strides = [1, 1]} : vector<16x16xbf16> to vector<16x4xbf16>
    %106 = vector.extract_strided_slice %46 {offsets = [0, 0], sizes = [16, 4], strides = [1, 1]} : vector<16x8xbf16> to vector<16x4xbf16>
    %cst_47 = arith.constant dense<0.000000e+00> : vector<16x16xf32>
    %107 = tpu.matmul %105, %106, %cst_47 {dimension_numbers = #tpu.dot_dimension_numbers<[1], [1], [0], [0], [0, 0, 1, 0], [], []>} : vector<16x4xbf16>, vector<16x4xbf16>, vector<16x16xf32> -> vector<16x16xf32>
    %108 = arith.addf %104, %107 : vector<16x16xf32>
    %109 = arith.addf %108, %48 : vector<16x16xf32>
    %cst_48 = arith.constant dense<0xFF800000> : vector<16xf32>
    %110 = vector.multi_reduction <maximumf>, %109, %cst_48 [1] : vector<16x16xf32> to vector<16xf32>
    %111 = vector.shape_cast %110 : vector<16xf32> to vector<16x1xf32>
    %112 = vector.broadcast %111 : vector<16x1xf32> to vector<16x16xf32>
    %113 = arith.subf %109, %112 : vector<16x16xf32>
    %114 = math.exp %113 : vector<16x16xf32>
    %cst_49 = arith.constant dense<0.000000e+00> : vector<16xf32>
    %115 = vector.multi_reduction <add>, %114, %cst_49 [1] : vector<16x16xf32> to vector<16xf32>
    %116 = vector.shape_cast %115 : vector<16xf32> to vector<16x1xf32>
    %117 = tpu.reciprocal %116 {approx = true} : vector<16x1xf32> -> vector<16x1xf32>
    %118 = vector.broadcast %117 : vector<16x1xf32> to vector<16x16xf32>
    %119 = arith.mulf %114, %118 : vector<16x16xf32>
    %120 = arith.truncf %119 : vector<16x16xf32> to vector<16x16xbf16>
    %121 = vector.extract_strided_slice %47 {offsets = [0, 0], sizes = [16, 8], strides = [1, 1]} : vector<16x16xbf16> to vector<16x8xbf16>
    %cst_50 = arith.constant dense<0.000000e+00> : vector<16x8xf32>
    %122 = tpu.matmul %120, %121, %cst_50 {dimension_numbers = #tpu.dot_dimension_numbers<[1], [0], [0], [1], [0, 0, 1, 1], [], []>} : vector<16x16xbf16>, vector<16x8xbf16>, vector<16x8xf32> -> vector<16x8xf32>
    %123 = arith.truncf %122 : vector<16x8xf32> to vector<16x8xbf16>
    %c16 = arith.constant 16 : index
    %c0_51 = arith.constant 0 : index
    %124 = vector.load %arg15[%c16, %c0_51] : memref<32x32xbf16, #tpu.memory_space<vmem>>, vector<8x32xbf16>
    %cst_52 = arith.constant dense<0.000000e+00> : vector<16x32xf32>
    %125 = tpu.matmul %123, %124, %cst_52 {dimension_numbers = #tpu.dot_dimension_numbers<[1], [0], [0], [1], [0, 0, 1, 1], [], []>} : vector<16x8xbf16>, vector<8x32xbf16>, vector<16x32xf32> -> vector<16x32xf32>
    %126 = arith.addf %101, %125 : vector<16x32xf32>
    %127 = vector.extract_strided_slice %34 {offsets = [0, 12], sizes = [16, 4], strides = [1, 1]} : vector<16x16xbf16> to vector<16x4xbf16>
    %128 = vector.extract_strided_slice %42 {offsets = [0, 4], sizes = [16, 4], strides = [1, 1]} : vector<16x8xbf16> to vector<16x4xbf16>
    %cst_53 = arith.constant dense<0.000000e+00> : vector<16x16xf32>
    %129 = tpu.matmul %127, %128, %cst_53 {dimension_numbers = #tpu.dot_dimension_numbers<[1], [1], [0], [0], [0, 0, 1, 0], [], []>} : vector<16x4xbf16>, vector<16x4xbf16>, vector<16x16xf32> -> vector<16x16xf32>
    %130 = vector.extract_strided_slice %38 {offsets = [0, 12], sizes = [16, 4], strides = [1, 1]} : vector<16x16xbf16> to vector<16x4xbf16>
    %131 = vector.extract_strided_slice %46 {offsets = [0, 4], sizes = [16, 4], strides = [1, 1]} : vector<16x8xbf16> to vector<16x4xbf16>
    %cst_54 = arith.constant dense<0.000000e+00> : vector<16x16xf32>
    %132 = tpu.matmul %130, %131, %cst_54 {dimension_numbers = #tpu.dot_dimension_numbers<[1], [1], [0], [0], [0, 0, 1, 0], [], []>} : vector<16x4xbf16>, vector<16x4xbf16>, vector<16x16xf32> -> vector<16x16xf32>
    %133 = arith.addf %129, %132 : vector<16x16xf32>
    %134 = arith.addf %133, %48 : vector<16x16xf32>
    %cst_55 = arith.constant dense<0xFF800000> : vector<16xf32>
    %135 = vector.multi_reduction <maximumf>, %134, %cst_55 [1] : vector<16x16xf32> to vector<16xf32>
    %136 = vector.shape_cast %135 : vector<16xf32> to vector<16x1xf32>
    %137 = vector.broadcast %136 : vector<16x1xf32> to vector<16x16xf32>
    %138 = arith.subf %134, %137 : vector<16x16xf32>
    %139 = math.exp %138 : vector<16x16xf32>
    %cst_56 = arith.constant dense<0.000000e+00> : vector<16xf32>
    %140 = vector.multi_reduction <add>, %139, %cst_56 [1] : vector<16x16xf32> to vector<16xf32>
    %141 = vector.shape_cast %140 : vector<16xf32> to vector<16x1xf32>
    %142 = tpu.reciprocal %141 {approx = true} : vector<16x1xf32> -> vector<16x1xf32>
    %143 = vector.broadcast %142 : vector<16x1xf32> to vector<16x16xf32>
    %144 = arith.mulf %139, %143 : vector<16x16xf32>
    %145 = arith.truncf %144 : vector<16x16xf32> to vector<16x16xbf16>
    %146 = vector.extract_strided_slice %47 {offsets = [0, 8], sizes = [16, 8], strides = [1, 1]} : vector<16x16xbf16> to vector<16x8xbf16>
    %cst_57 = arith.constant dense<0.000000e+00> : vector<16x8xf32>
    %147 = tpu.matmul %145, %146, %cst_57 {dimension_numbers = #tpu.dot_dimension_numbers<[1], [0], [0], [1], [0, 0, 1, 1], [], []>} : vector<16x16xbf16>, vector<16x8xbf16>, vector<16x8xf32> -> vector<16x8xf32>
    %148 = arith.truncf %147 : vector<16x8xf32> to vector<16x8xbf16>
    %c24 = arith.constant 24 : index
    %c0_58 = arith.constant 0 : index
    %149 = vector.load %arg15[%c24, %c0_58] : memref<32x32xbf16, #tpu.memory_space<vmem>>, vector<8x32xbf16>
    %cst_59 = arith.constant dense<0.000000e+00> : vector<16x32xf32>
    %150 = tpu.matmul %148, %149, %cst_59 {dimension_numbers = #tpu.dot_dimension_numbers<[1], [0], [0], [1], [0, 0, 1, 1], [], []>} : vector<16x8xbf16>, vector<8x32xbf16>, vector<16x32xf32> -> vector<16x32xf32>
    %151 = arith.addf %126, %150 : vector<16x32xf32>
    %c0_60 = arith.constant 0 : index
    %c0_61 = arith.constant 0 : index
    %152 = vector.load %arg17[%c0_60, %c0_61] : memref<16x32xf32, #tpu.memory_space<vmem>>, vector<16x32xf32>
    tpu.vector_store %arg17[%c0_60, %c0_61], %151 {strides = array<i32>} : memref<16x32xf32, #tpu.memory_space<vmem>>, vector<16x32xf32>,
    %153 = arith.mulf %151, %151 : vector<16x32xf32>
    %cst_62 = arith.constant dense<0.000000e+00> : vector<32xf32>
    %154 = vector.multi_reduction <add>, %153, %cst_62 [0] : vector<16x32xf32> to vector<32xf32>
    %155 = vector.shape_cast %154 : vector<32xf32> to vector<1x32xf32>
    %cst_63 = arith.constant dense<0.000000e+00> : vector<1xf32>
    %156 = vector.multi_reduction <add>, %155, %cst_63 [1] : vector<1x32xf32> to vector<1xf32>
    %157 = vector.shape_cast %156 : vector<1xf32> to vector<1x1xf32>
    %c0_64 = arith.constant 0 : index
    %c0_65 = arith.constant 0 : index
    %158 = vector.load %arg18[%c0_64, %c0_65] : memref<1x1xf32, #tpu.memory_space<vmem>>, vector<1x1xf32>
    tpu.vector_store %arg18[%c0_64, %c0_65], %157 {strides = array<i32>} : memref<1x1xf32, #tpu.memory_space<vmem>>, vector<1x1xf32>,
    return
  }
  func.func @transform_0(%arg0: i32) -> (i32, i32) {
    %c0_i32 = arith.constant 0 : i32
    %c0_i32_0 = arith.constant 0 : i32
    %c0_i32_1 = arith.constant 0 : i32
    return %c0_i32, %c0_i32_0 : i32, i32
  }
  func.func @transform_1(%arg0: i32) -> (i32, i32) {
    %c0_i32 = arith.constant 0 : i32
    %c0_i32_0 = arith.constant 0 : i32
    return %arg0, %c0_i32 : i32, i32
  }
  func.func @transform_2(%arg0: i32) -> (i32, i32) {
    %c0_i32 = arith.constant 0 : i32
    %c0_i32_0 = arith.constant 0 : i32
    %c0_i32_1 = arith.constant 0 : i32
    return %c0_i32, %c0_i32_0 : i32, i32
  }
  func.func @transform_3(%arg0: i32) -> (i32, i32) {
    %c0_i32 = arith.constant 0 : i32
    %c0_i32_0 = arith.constant 0 : i32
    %c0_i32_1 = arith.constant 0 : i32
    return %c0_i32, %c0_i32_0 : i32, i32
  }
  func.func @transform_4(%arg0: i32) -> (i32, i32) {
    %c0_i32 = arith.constant 0 : i32
    %c0_i32_0 = arith.constant 0 : i32
    %c0_i32_1 = arith.constant 0 : i32
    return %c0_i32, %c0_i32_0 : i32, i32
  }
  func.func @transform_5(%arg0: i32) -> (i32, i32) {
    %c0_i32 = arith.constant 0 : i32
    %c0_i32_0 = arith.constant 0 : i32
    %c0_i32_1 = arith.constant 0 : i32
    return %c0_i32, %c0_i32_0 : i32, i32
  }
  func.func @transform_6(%arg0: i32) -> (i32, i32) {
    %c0_i32 = arith.constant 0 : i32
    %c0_i32_0 = arith.constant 0 : i32
    %c0_i32_1 = arith.constant 0 : i32
    return %c0_i32, %c0_i32_0 : i32, i32
  }
  func.func @transform_7(%arg0: i32) -> (i32, i32) {
    %c0_i32 = arith.constant 0 : i32
    %c0_i32_0 = arith.constant 0 : i32
    %c0_i32_1 = arith.constant 0 : i32
    return %c0_i32, %c0_i32_0 : i32, i32
  }
  func.func @transform_8(%arg0: i32) -> (i32, i32) {
    %c0_i32 = arith.constant 0 : i32
    %c0_i32_0 = arith.constant 0 : i32
    %c0_i32_1 = arith.constant 0 : i32
    return %c0_i32, %c0_i32_0 : i32, i32
  }
  func.func @transform_9(%arg0: i32) -> (i32, i32) {
    %c0_i32 = arith.constant 0 : i32
    %c0_i32_0 = arith.constant 0 : i32
    %c0_i32_1 = arith.constant 0 : i32
    return %c0_i32, %c0_i32_0 : i32, i32
  }
  func.func @transform_10(%arg0: i32) -> (i32, i32) {
    %c0_i32 = arith.constant 0 : i32
    %c0_i32_0 = arith.constant 0 : i32
    %c0_i32_1 = arith.constant 0 : i32
    return %c0_i32, %c0_i32_0 : i32, i32
  }
  func.func @transform_11(%arg0: i32) -> (i32, i32) {
    %c0_i32 = arith.constant 0 : i32
    %c0_i32_0 = arith.constant 0 : i32
    %c0_i32_1 = arith.constant 0 : i32
    return %c0_i32, %c0_i32_0 : i32, i32
  }
  func.func @transform_12(%arg0: i32) -> (i32, i32) {
    %c0_i32 = arith.constant 0 : i32
    %c0_i32_0 = arith.constant 0 : i32
    %c0_i32_1 = arith.constant 0 : i32
    return %c0_i32, %c0_i32_0 : i32, i32
  }
  func.func @transform_13(%arg0: i32) -> (i32, i32) {
    %c0_i32 = arith.constant 0 : i32
    %c0_i32_0 = arith.constant 0 : i32
    %c0_i32_1 = arith.constant 0 : i32
    return %c0_i32, %c0_i32_0 : i32, i32
  }
  func.func @transform_14(%arg0: i32) -> (i32, i32) {
    %c0_i32 = arith.constant 0 : i32
    %c0_i32_0 = arith.constant 0 : i32
    %c0_i32_1 = arith.constant 0 : i32
    return %c0_i32, %c0_i32_0 : i32, i32
  }
  func.func @transform_15(%arg0: i32) -> (i32, i32) {
    %c0_i32 = arith.constant 0 : i32
    %c0_i32_0 = arith.constant 0 : i32
    %c0_i32_1 = arith.constant 0 : i32
    return %c0_i32, %c0_i32_0 : i32, i32
  }
  func.func @transform_16(%arg0: i32) -> (i32, i32) {
    %c0_i32 = arith.constant 0 : i32
    %c0_i32_0 = arith.constant 0 : i32
    return %arg0, %c0_i32 : i32, i32
  }
  func.func @transform_17(%arg0: i32) -> (i32, i32) {
    %c0_i32 = arith.constant 0 : i32
    %c0_i32_0 = arith.constant 0 : i32
    return %arg0, %c0_i32 : i32, i32
  }
}

</mosaic_0001>

<bundles_post_ra>
// kernel: tpu_custom_call.1
= control target key start
LH: loop header
LB: loop body
LE: loop exit
PB: predicated region body
PF: predicated region fallthrough
CT: control target
= control target key end

     0   :  { %s2045_s0 = inlined_call_operand.<no memory space> [shape: f32[1,1], index: 0, kind: input, shape index: {}]   ;;  %s2046_s1 = inlined_call_operand.vmem [shape: f32[16,32], index: 1, kind: input, shape index: {}]   ;;  %s2047_s2 = inlined_call_operand.vmem [shape: f32[1,32], index: 2, kind: input, shape index: {}]   ;;  %s2048_s3 = inlined_call_operand.vmem [shape: f32[16,16], index: 3, kind: input, shape index: {}]   ;;  %s2049_s4 = inlined_call_operand.vmem [shape: f32[16,16], index: 4, kind: input, shape index: {}]   ;;  %s2050_s5 = inlined_call_operand.vmem [shape: f32[16,8], index: 5, kind: input, shape index: {}]   ;;  %s2051_s6 = inlined_call_operand.vmem [shape: f32[16,8], index: 6, kind: input, shape index: {}]   ;;  %s2052_s7 = inlined_call_operand.vmem [shape: f32[16,16], index: 7, kind: input, shape index: {}]   ;;  %s2053_s8 = inlined_call_operand.vmem [shape: bf16[32,32], index: 8, kind: input, shape index: {}]   ;;  %s2054_s9 = inlined_call_operand.vmem [shape: f32[1,32], index: 9, kind: input, shape index: {}]   ;;  %s2055_s10 = inlined_call_operand.vmem [shape: bf16[32,16], index: 10, kind: input, shape index: {}]   ;;  %s2056_s11 = inlined_call_operand.vmem [shape: f32[1,16], index: 11, kind: input, shape index: {}]   ;;  %s2057_s12 = inlined_call_operand.vmem [shape: bf16[32,16], index: 12, kind: input, shape index: {}]   ;;  %s2058_s13 = inlined_call_operand.vmem [shape: f32[1,16], index: 13, kind: input, shape index: {}]   ;;  %s2059_s14 = inlined_call_operand.vmem [shape: bf16[32,32], index: 14, kind: input, shape index: {}]   ;;  %s2060_s15 = inlined_call_operand.vmem [shape: f32[1,32], index: 15, kind: input, shape index: {}]   ;;  %s2061_s16 = inlined_call_operand.hbm [shape: f32[16,32], index: 16, kind: output, shape index: {0}]   ;;  %s2062_s17 = inlined_call_operand.hbm [shape: f32[1,1], index: 17, kind: output, shape index: {1}]  }
   0x1   :  { %2064 = sst [smem:[#allocation9_spill]] %s2045_s0 }
   0x2   :  { %2065 = sst [smem:[#allocation10_spill]] %s2046_s1 }
   0x3   :  { %24 = vsyncpa [#allocation4], 0  ;;  %v1526_v0 = vld [vmem:[%s2055_s10] sm:$0xff]   ;;  %v1612_v1 = vmov 0.0   ;;  %v1527_v2 = vld [vmem:[%s2055_s10 + $0x8] sm:$0xff]   ;;  %vm1613_vm0 = vmmov 0  }
   0x4   :  { %1386 = vmatprep.subr.bf16.mxu1 %v1612_v1  ;;  %1378 = vmatprep.subr.bf16.mxu0 %v1612_v1  ;;  %v1528_v3 = vld [vmem:[%s2053_s8] sm:$0xff]   ;;  %s2066_s18 = sld [smem:[#allocation10_spill]]  ;;  %s2067_s23 = sld [smem:[#allocation9_spill]]  ;;  %v1529_v10 = vld [vmem:[%s2053_s8 + $0x8] sm:$0xff]   ;;  %vm98_vm1 = vcmask 261120  }
   0x5   :  { %1387 = vmatpush3.bf16.msra.mxu1 %v1526_v0  ;;  %1390 = vmatprep.mubr.msk.bf16.mxu1 %vm1613_vm0, %v1612_v1  ;;  %v1307_v6 = vld [vmem:[%s2047_s2] ss:$0 sm:$0xff]  ;;  %s1614_s29 = smov 8   ;;  %v278_v15 = vld [vmem:[%s2051_s6 + $0x8] sm:$0xff] }
   0x6   :  { %1388 = vmatprep.subr.bf16.mxu1 %v1612_v1  ;;  %1382 = vmatprep.mubr.msk.bf16.mxu0 %vm1613_vm0, %v1612_v1  ;;  %v277_v11 = vld [vmem:[%s2051_s6] sm:$0xff]  ;;  %v1771_v16 = vld [vmem:[%s2050_s5 + $0x8] sm:$0xff] }
   0x7   :  { %1379 = vmatpush3.bf16.msra.mxu0 %v1528_v3  ;;  %v1760_v12 = vld [vmem:[%s2050_s5] sm:$0xff]  ;;  %329 = vrot.lane.b32.xlu0 %v277_v11, %s1614_s29 }
   0x8   :  { %1380 = vmatprep.subr.bf16.mxu0 %v1612_v1  ;;  %350 = vrot.lane.b32.xlu1 %v1760_v12, %s1614_s29 }
   0x9   :  { %1389 = vmatpush3.bf16.msra.mxu1 %v1527_v2 }
   0xa   :  { %v1733_v4 = vld [vmem:[%s2066_s18] sm:$0xff]  ;;  %v1738_v5 = vld [vmem:[%s2066_s18 + $0x8] sm:$0xff]  ;;  %v71_v7 = vstv %s2067_s23  ;;  %1402 = vmatprep.subr.bf16.mxu1 %v1612_v1 }
   0xb   :  { %v68_v8 = vmul.f32 %v1307_v6, %v1733_v4  ;;  %v69_v9 = vmul.f32 %v1307_v6, %v1738_v5  ;;  %1381 = vmatpush3.bf16.msra.mxu0 %v1529_v10 }
   0xd   :  { %v72_v13 = vmul.f32 %v71_v7, %v68_v8  ;;  %v73_v14 = vmul.f32 %v71_v7, %v69_v9 }
   0xf   :  { %v74_v17 = vpack.c.bf16 %v73_v14, %v72_v13 }
  0x10   :  { %25 = vsyncpa [#allocation6], 0  ;;  %1394 = vmatprep.subr.bf16.mxu0 %v1612_v1  ;;  %331 = vrot.lane.b32.xlu0 %v278_v15, %s1614_s29  ;;  %v273_v18 = vld [vmem:[%s2049_s4] sm:$0xff]  ;;  %v274_v19 = vld [vmem:[%s2049_s4 + $0x8] sm:$0xff]  ;;  %s1615_s1 = smov 16   ;;  %s1617_s27 = smov 112  }
  0x11   :  { %1391 = vmatmul.mubr.msk.bf16.vlgmr.msra.gmra.mrb[0].mxu1 %vm98_vm1, %v74_v17  ;;  %1383 = vmatmul.mubr.msk.bf16.vlgmr.msra.gmra.mrb[0].mxu0 %vm98_vm1, %v74_v17  ;;  %v1530_v20 = vld [vmem:[%s2057_s12] sm:$0xff]   ;;  %v1531_v23 = vld [vmem:[%s2057_s12 + $0x8] sm:$0xff]   ;;  %vm389_vm2 = vcmask 31744   ;;  %vm486_vm3 = vcmask 130048   ;;  %s1618_s6 = smov 116   ;;  %s1619_s19 = smov 108  }
  0x12   :  { %352 = vrot.lane.b32.xlu1 %v1771_v16, %s1614_s29  ;;  %1398 = vmatprep.mubr.msk.bf16.mxu0 %vm1613_vm0, %v1612_v1  ;;  %v1312_v21 = vld [vmem:[%s2056_s11] ss:$0 sm:$0xff]  ;;  %v1821_v39 = vld [vmem:[%s2048_s3 + $0x8] sm:$0xff]  ;;  %vm560_vm4 = vcmask 1043456   ;;  %vm556_vm5 = vcmask 64512   ;;  %s1622_s22 = smov 100  }
  0x13   :  { %1404 = vmatprep.mubr.msk.bf16.mxu1 %vm1613_vm0, %v1612_v1  ;;  %1395 = vmatpush3.bf16.msra.mxu0 %v1530_v20  ;;  %v1308_v28 = vld [vmem:[%s2054_s9] ss:$0 sm:$0xff] }
  0x14   :  { %283 = vrot.lane.b32.xlu0 %v273_v18, %s1615_s1  ;;  %1396 = vmatprep.subr.bf16.mxu0 %v1612_v1  ;;  %v1812_v37 = vld [vmem:[%s2048_s3] sm:$0xff]  ;;  %s1616_s3 = smov 120  }
  0x16   :  { %285 = vrot.lane.b32.xlu1 %v274_v19, %s1615_s1 }
  0x17   :  { %1397 = vmatpush3.bf16.msra.mxu0 %v1531_v23 }
  0x18   :  { %1408 = vmatprep.subr.bf16.mxu0 %v1612_v1 }
  0x1a   :  { %1399 = vmatmul.mubr.msk.bf16.vlgmr.msra.gmra.mrb[4].mxu0 %vm98_vm1, %v74_v17 }
  0x1b   :  { %1410 = vmatprep.mubr.msk.bf16.mxu0 %vm1613_vm0, %v1612_v1 }
  0x79   :  { %v330_v38 = vpop.permute.xlu0 %329 }
  0x7a   :  { %v351_v48 = vpop.permute.xlu1 %350 }
  0x82   :  { %v332_v43 = vpop.permute.xlu0 %331 }
  0x84   :  { %v353_v49 = vpop.permute.xlu1 %352 }
  0x86   :  { %v284_v46 = vpop.permute.xlu0 %283 }
  0x88   :  { %v286_v50 = vpop.permute.xlu1 %285 }
  0xe4   :  { %v200_v22 = vpop.f32.mrb[0].mxu1  ;;  %v136_v26 = vpop.f32.mrb[0].mxu0 }
  0xe5   :  { %v201_v24 = vadd.f32 %v1312_v21, %v200_v22  ;;  %v1392_v25 = vpop.f32.mrb[1].mxu1  ;;  %v1384_v29 = vpop.f32.mrb[1].mxu0  ;;  %v1807_v35 = vadd.f32 %v1308_v28, %v136_v26 }
  0xe6   :  { %v203_v27 = vpop.f32.mrb[2].mxu1  ;;  %v139_v33 = vpop.f32.mrb[2].mxu0 }
  0xe7   :  { %v204_v30 = vadd.f32 %v1312_v21, %v203_v27  ;;  %v1393_v31 = vpop.f32.mrb[3].mxu1  ;;  %v358_v32 = vmul.f32 %v277_v11, %v201_v24  ;;  %v1385_v34 = vpop.f32.mrb[3].mxu0  ;;  %v1823_v40 = vadd.f32 %v1308_v28, %v139_v33  ;;  %v312_v41 = vmul.f32 %v273_v18, %v1807_v35 }
  0xe8   :  { %v335_v44 = vmul.f32 %v330_v38, %v201_v24  ;;  %v289_v47 = vmul.f32 %v284_v46, %v1807_v35  ;;  %v356_v53 = vmul.f32 %v351_v48, %v201_v24  ;;  %v325_v8 = vmul.f32 %v1760_v12, %v201_v24  ;;  %v1316_v12 = vld [vmem:[%s2058_s13] ss:$0 sm:$0xff] }
  0xe9   :  { %362 = vrot.lane.b32.xlu0 %v358_v32, %s1614_s29  ;;  %v359_v36 = vmul.f32 %v278_v15, %v204_v30  ;;  %v313_v42 = vmul.f32 %v274_v19, %v1823_v40  ;;  %v336_v45 = vmul.f32 %v332_v43, %v204_v30  ;;  %v357_v52 = vmul.f32 %v353_v49, %v204_v30 }
  0xea   :  { %v290_v61 = vmul.f32 %v286_v50, %v1823_v40  ;;  %v326_v9 = vmul.f32 %v1771_v16, %v204_v30  ;;  %v279_v26 = vmul.f32 %v1812_v37, %v1807_v35  ;;  %v280_v27 = vmul.f32 %v1821_v39, %v1823_v40 }
  0xeb   :  { %364 = vrot.lane.b32.xlu1 %v359_v36, %s1614_s29 }
  0xed   :  { %304 = vrot.lane.b32.xlu0 %v1812_v37, %s1615_s1  ;;  %v264_v16 = vpop.f32.mrb[4].mxu0 }
  0xee   :  { %v265_v17 = vadd.f32 %v1316_v12, %v264_v16  ;;  %v1400_v18 = vpop.f32.mrb[5].mxu0 }
  0xef   :  { %306 = vrot.lane.b32.xlu1 %v1821_v39, %s1615_s1  ;;  %v267_v19 = vpop.f32.mrb[6].mxu0 }
  0xf0   :  { %v268_v20 = vadd.f32 %v1316_v12, %v267_v19  ;;  %v1401_v21 = vpop.f32.mrb[7].mxu0 }
  0xf1   :  { %316 = vrot.lane.b32.xlu0 %v312_v41, %s1615_s1  ;;  %v1889_v41 = vld [vmem:[%s2052_s7 + $0x8] sm:$0xff] }
  0xf2   :  { %v1859_v22 = vpack.c.bf16 %v268_v20, %v265_v17 }
  0xf3   :  { %318 = vrot.lane.b32.xlu1 %v313_v42, %s1615_s1  ;;  %s1621_s1 = smov 104  }
  0xf5   :  { %339 = vrot.lane.b32.xlu0 %v335_v44, %s1616_s3 }
  0xf7   :  { %341 = vrot.lane.b32.xlu1 %v336_v45, %s1616_s3 }
  0xfb   :  { %293 = vrot.lane.b32.xlu1 %v289_v47, %s1617_s27 }
 0x15b   :  { %v363_v51 = vpop.permute.xlu0 %362 }
 0x15c   :  { %v368_v55 = vadd.f32 %v363_v51, %v356_v53 }
 0x15d   :  { %v365_v54 = vpop.permute.xlu1 %364 }
 0x15e   :  { %v369_v56 = vadd.f32 %v365_v54, %v357_v52 }
 0x15f   :  { %v305_v57 = vpop.permute.xlu0 %304 }
 0x160   :  { %v1836_v58 = vpack.c.bf16 %v369_v56, %v368_v55  ;;  %v310_v62 = vmul.f32 %v305_v57, %v1807_v35  ;;  %v1884_v35 = vld [vmem:[%s2052_s7] sm:$0xff]  ;;  %s1620_s7 = smov 124  }
 0x161   :  { %v307_v59 = vpop.permute.xlu1 %306 }
 0x162   :  { %387 = vrot.lane.b32.xlu0 %v1836_v58, %s1616_s3  ;;  %v311_v63 = vmul.f32 %v307_v59, %v1823_v40  ;;  %v555_v59 = vld [vmem:[%s2059_s14] sm:$0xf] }
 0x163   :  { %v317_v60 = vpop.permute.xlu0 %316 }
 0x164   :  { %v322_v2 = vadd.f32 %v317_v60, %v310_v62  ;;  %v562_v60 = vsel %vm560_vm4, %v555_v59, 0 }
 0x165   :  { %v319_v0 = vpop.permute.xlu1 %318 }
 0x166   :  { %v323_v3 = vadd.f32 %v319_v0, %v311_v63  ;;  %295 = vrot.lane.b32.xlu0 %v290_v61, %s1617_s27 }
 0x167   :  { %v340_v6 = vpop.permute.xlu0 %339 }
 0x168   :  { %v1843_v7 = vpack.c.bf16 %v323_v3, %v322_v2  ;;  %v345_v11 = vsub.f32 %v325_v8, %v340_v6 }
 0x169   :  { %v342_v10 = vpop.permute.xlu1 %341 }
 0x16a   :  { %v346_v13 = vsub.f32 %v326_v9, %v342_v10  ;;  %384 = vrot.lane.b32.xlu1 %v1843_v7, %s1617_s27 }
 0x16c   :  { %v1848_v14 = vpack.c.bf16 %v346_v13, %v345_v11 }
 0x16d   :  { %v294_v25 = vpop.permute.xlu1 %293 }
 0x16e   :  { %v1852_v15 = vsel %vm389_vm2, %v1848_v14, 0  ;;  %v299_v29 = vsub.f32 %v279_v26, %v294_v25 }
 0x16f   :  { %1409 = vmatpush3.bf16.xpose.msra.mxu0 %v1852_v15 }
 0x170   :  { %1420 = vmatprep.subr.bf16.mxu0 %v1612_v1 }
 0x1d4   :  { %v388_v23 = vpop.permute.xlu0 %387 }
 0x1d5   :  { %v1862_v24 = vsel %vm389_vm2, %v388_v23, 0 }
 0x1d6   :  { %1403 = vmatpush3.bf16.xpose.msra.mxu1 %v1862_v24 }
 0x1d7   :  { %1414 = vmatprep.subr.bf16.mxu1 %v1612_v1 }
 0x1d8   :  { %v296_v28 = vpop.permute.xlu0 %295 }
 0x1d9   :  { %v300_v30 = vsub.f32 %v280_v27, %v296_v28 }
 0x1db   :  { %v1870_v31 = vpack.c.bf16 %v300_v30, %v299_v29 }
 0x1dc   :  { %v385_v32 = vpop.permute.xlu1 %384 }
 0x1dd   :  { %1405 = vmatmul.mubr.msk.bf16.vlgmr.msra.gmra.mrb[4].mxu1 %vm389_vm2, %v385_v32  ;;  %1411 = vmatmul.mubr.msk.bf16.vlgmr.msra.gmra.mrb[8].mxu0 %vm389_vm2, %v1870_v31 }
 0x1de   :  { %1415 = vmatpush3.bf16.msra.mxu1 %v1859_v22  ;;  %1416 = vmatprep.mubr.msk.bf16.mxu1 %vm1613_vm0, %v1612_v1 }
 0x1df   :  { %1426 = vmatprep.subr.bf16.mxu1 %v1612_v1  ;;  %1422 = vmatprep.mubr.msk.bf16.mxu0 %vm1613_vm0, %v1612_v1 }
 0x1e0   :  { %1421 = vmatpush3.bf16.msra.mxu0 %v562_v60 }
 0x1e1   :  { %1432 = vmatprep.subr.bf16.mxu0 %v1612_v1 }
 0x2b0   :  { %v430_v33 = vpop.f32.mrb[4].mxu1  ;;  %v477_v34 = vpop.f32.mrb[8].mxu0 }
 0x2b1   :  { %v478_v36 = vadd.f32 %v477_v34, %v430_v33  ;;  %v1406_v37 = vpop.f32.mrb[5].mxu1  ;;  %v1412_v38 = vpop.f32.mrb[9].mxu0 }
 0x2b2   :  { %v433_v39 = vpop.f32.mrb[6].mxu1  ;;  %v480_v40 = vpop.f32.mrb[10].mxu0 }
 0x2b3   :  { %v481_v42 = vadd.f32 %v480_v40, %v433_v39  ;;  %v1407_v43 = vpop.f32.mrb[7].mxu1  ;;  %v1413_v44 = vpop.f32.mrb[11].mxu0  ;;  %v484_v45 = vadd.f32 %v478_v36, %v1884_v35 }
 0x2b5   :  { %v487_v46 = vsel %vm486_vm3, %v484_v45, -inf  ;;  %v485_v47 = vadd.f32 %v481_v42, %v1889_v41 }
 0x2b6   :  { %488 = vmax.xlane.f32.xlu0 %v487_v46 }
 0x2b7   :  { %v490_v48 = vsel %vm486_vm3, %v485_v47, -inf }
 0x2b8   :  { %491 = vmax.xlane.f32.xlu1 %v490_v48 }
 0x2c9   :  { %609 = vrot.lane.b32.xlu1 %v1836_v58, %s1618_s6 }
 0x2cd   :  { %607 = vrot.lane.b32.xlu1 %v1843_v7, %s1619_s19 }
 0x2d1   :  { %659 = vrot.lane.b32.xlu1 %v1870_v31, %s1620_s7 }
 0x343   :  { %v489_v49 = vpop.xlane.xlu0 %488 }
 0x344   :  { %v493_v50 = vsub.f32 %v484_v45, %v489_v49 }
 0x345   :  { %v492_v51 = vpop.xlane.xlu1 %491 }
 0x346   :  { %v495_v52 = vmul.f32 1.442695, %v493_v50  ;;  %v494_v53 = vsub.f32 %v485_v47, %v492_v51  ;;  %v785_v50 = vld [vmem:[%s2059_s14 + $0x4] sm:$0xf] }
 0x347   :  { %v790_v51 = vsel %vm560_vm4, %v785_v50, 0 }
 0x348   :  { %1532 = vpow2.f32 %v495_v52  ;;  %v497_v54 = vmul.f32 1.442695, %v494_v53 }
 0x349   :  { %v610_v6 = vpop.permute.xlu1 %609 }
 0x34a   :  { %1534 = vpow2.f32 %v497_v54  ;;  %v1908_v9 = vsel %vm389_vm2, %v610_v6, 0 }
 0x34d   :  { %v608_v10 = vpop.permute.xlu1 %607 }
 0x351   :  { %v660_v25 = vpop.permute.xlu1 %659 }
 0x352   :  { %v1533_v55 = vpop.eup %1532 }
 0x353   :  { %v499_v56 = vsel %vm486_vm3, %v1533_v55, 0.0 }
 0x354   :  { %v1535_v57 = vpop.eup %1534  ;;  %500 = vadd.xlane.f32.xlu0 %v499_v56 }
 0x355   :  { %v502_v58 = vsel %vm486_vm3, %v1535_v57, 0.0 }
 0x358   :  { %503 = vadd.xlane.f32.xlu0 %v502_v58 }
 0x36e   :  { %662 = vrot.lane.b32.xlu0 %v1848_v14, %s1620_s7 }
 0x3e1   :  { %v501_v61 = vpop.xlane.xlu0 %500 }
 0x3e2   :  { %1536 = vrcp.f32 %v501_v61 }
 0x3e5   :  { %v504_v62 = vpop.xlane.xlu0 %503 }
 0x3e6   :  { %1538 = vrcp.f32 %v504_v62 }
 0x3e9   :  { %v663_v14 = vpop.permute.xlu0 %662 }
 0x3ea   :  { %v1919_v18 = vsel %vm389_vm2, %v663_v14, 0 }
 0x3ec   :  { %v1537_v63 = vpop.eup %1536 }
 0x3ed   :  { %v507_v2 = vmul.f32 %v1537_v63, %v1533_v55 }
 0x3f0   :  { %v1539_v0 = vpop.eup %1538 }
 0x3f1   :  { %v508_v3 = vmul.f32 %v1539_v0, %v1535_v57 }
 0x3f3   :  { %v509_v8 = vpack.c.bf16 %v508_v3, %v507_v2 }
 0x3f5   :  { %1417 = vmatmul.mubr.msk.bf16.vlgmr.msra.gmra.mrb[8].mxu1 %vm486_vm3, %v509_v8 }
 0x3f6   :  { %1427 = vmatpush3.bf16.xpose.msra.mxu1 %v1908_v9  ;;  %1428 = vmatprep.mubr.msk.bf16.mxu1 %vm1613_vm0, %v1612_v1 }
 0x3f7   :  { %1438 = vmatprep.subr.bf16.mxu1 %v1612_v1 }
 0x3fd   :  { %1429 = vmatmul.mubr.msk.bf16.vlgmr.msra.gmra.mrb[12].mxu1 %vm389_vm2, %v608_v10 }
 0x3fe   :  { %1440 = vmatprep.mubr.msk.bf16.mxu1 %vm1613_vm0, %v1612_v1 }
 0x4c8   :  { %v547_v11 = vpop.f32.mrb[8].mxu1 }
 0x4c9   :  { %v1418_v13 = vpop.f32.mrb[9].mxu1 }
 0x4ca   :  { %v550_v12 = vpop.f32.mrb[10].mxu1 }
 0x4cb   :  { %v554_v16 = vpack.c.bf16 %v550_v12, %v547_v11  ;;  %v1419_v17 = vpop.f32.mrb[11].mxu1 }
 0x4cd   :  { %1423 = vmatmul.mubr.msk.bf16.vlgmr.msra.gmra.mrb[12].mxu0 %vm556_vm5, %v554_v16 }
 0x4ce   :  { %1433 = vmatpush3.bf16.xpose.msra.mxu0 %v1919_v18  ;;  %1434 = vmatprep.mubr.msk.bf16.mxu0 %vm1613_vm0, %v1612_v1 }
 0x4cf   :  { %1444 = vmatprep.subr.bf16.mxu0 %v1612_v1 }
 0x4d0   :  { %v651_v19 = vpop.f32.mrb[12].mxu1 }
 0x4d1   :  { %v1430_v20 = vpop.f32.mrb[13].mxu1 }
 0x4d2   :  { %v654_v21 = vpop.f32.mrb[14].mxu1 }
 0x4d3   :  { %v1431_v23 = vpop.f32.mrb[15].mxu1 }
 0x4d5   :  { %1435 = vmatmul.mubr.msk.bf16.vlgmr.msra.gmra.mrb[16].mxu0 %vm389_vm2, %v660_v25 }
 0x4d6   :  { %1446 = vmatprep.mubr.msk.bf16.mxu0 %vm1613_vm0, %v1612_v1  ;;  %1445 = vmatpush3.bf16.msra.mxu0 %v790_v51 }
 0x4d7   :  { %1456 = vmatprep.subr.bf16.mxu0 %v1612_v1 }
 0x5a8   :  { %v704_v26 = vpop.f32.mrb[16].mxu0 }
 0x5a9   :  { %v705_v27 = vadd.f32 %v704_v26, %v651_v19  ;;  %v1436_v28 = vpop.f32.mrb[17].mxu0 }
 0x5aa   :  { %v707_v29 = vpop.f32.mrb[18].mxu0 }
 0x5ab   :  { %v708_v30 = vadd.f32 %v707_v29, %v654_v21  ;;  %v1437_v32 = vpop.f32.mrb[19].mxu0  ;;  %v711_v33 = vadd.f32 %v705_v27, %v1884_v35 }
 0x5ad   :  { %v713_v34 = vsel %vm486_vm3, %v711_v33, -inf  ;;  %v712_v36 = vadd.f32 %v708_v30, %v1889_v41 }
 0x5ae   :  { %714 = vmax.xlane.f32.xlu0 %v713_v34 }
 0x5af   :  { %v716_v37 = vsel %vm486_vm3, %v712_v36, -inf }
 0x5b0   :  { %717 = vmax.xlane.f32.xlu1 %v716_v37 }
 0x5c1   :  { %737 = vrot.lane.b32.xlu1 %v1859_v22, %s1616_s3 }
 0x5c5   :  { %881 = vrot.lane.b32.xlu1 %v1870_v31, %s1616_s3 }
 0x63b   :  { %v715_v38 = vpop.xlane.xlu0 %714 }
 0x63c   :  { %v719_v39 = vsub.f32 %v711_v33, %v715_v38  ;;  %v997_v33 = vld [vmem:[%s2059_s14 + $0x8] sm:$0xf] }
 0x63d   :  { %v718_v40 = vpop.xlane.xlu1 %717  ;;  %v1002_v34 = vsel %vm560_vm4, %v997_v33, 0 }
 0x63e   :  { %v721_v42 = vmul.f32 1.442695, %v719_v39  ;;  %v720_v43 = vsub.f32 %v712_v36, %v718_v40 }
 0x640   :  { %1540 = vpow2.f32 %v721_v42  ;;  %v723_v44 = vmul.f32 1.442695, %v720_v43 }
 0x641   :  { %v1937_v45 = vpop.permute.xlu1 %737 }
 0x642   :  { %1542 = vpow2.f32 %v723_v44  ;;  %1439 = vmatpush3.bf16.msra.mxu1 %v1937_v45 }
 0x643   :  { %1450 = vmatprep.subr.bf16.mxu1 %v1612_v1 }
 0x645   :  { %v882_v6 = vpop.permute.xlu1 %881 }
 0x64a   :  { %v1541_v46 = vpop.eup %1540 }
 0x64b   :  { %v725_v47 = vsel %vm486_vm3, %v1541_v46, 0.0 }
 0x64c   :  { %v1543_v48 = vpop.eup %1542  ;;  %726 = vadd.xlane.f32.xlu0 %v725_v47 }
 0x64d   :  { %v728_v49 = vsel %vm486_vm3, %v1543_v48, 0.0 }
 0x650   :  { %729 = vadd.xlane.f32.xlu0 %v728_v49 }
 0x666   :  { %835 = vrot.lane.b32.xlu0 %v1843_v7, %s1621_s1 }
 0x6d9   :  { %v727_v52 = vpop.xlane.xlu0 %726 }
 0x6da   :  { %1544 = vrcp.f32 %v727_v52 }
 0x6dd   :  { %v730_v53 = vpop.xlane.xlu0 %729 }
 0x6de   :  { %1546 = vrcp.f32 %v730_v53 }
 0x6e1   :  { %v836_v59 = vpop.permute.xlu0 %835 }
 0x6e4   :  { %v1545_v54 = vpop.eup %1544 }
 0x6e5   :  { %v733_v56 = vmul.f32 %v1545_v54, %v1541_v46 }
 0x6e8   :  { %v1547_v55 = vpop.eup %1546 }
 0x6e9   :  { %v734_v57 = vmul.f32 %v1547_v55, %v1543_v48 }
 0x6eb   :  { %v735_v58 = vpack.c.bf16 %v734_v57, %v733_v56 }
 0x6ed   :  { %1441 = vmatmul.mubr.msk.bf16.vlgmr.msra.gmra.mrb[16].mxu1 %vm486_vm3, %v735_v58 }
 0x6ee   :  { %1451 = vmatpush3.bf16.xpose.msra.mxu1 %v1862_v24  ;;  %1452 = vmatprep.mubr.msk.bf16.mxu1 %vm1613_vm0, %v1612_v1 }
 0x6ef   :  { %1462 = vmatprep.subr.bf16.mxu1 %v1612_v1 }
 0x6f5   :  { %1453 = vmatmul.mubr.msk.bf16.vlgmr.msra.gmra.mrb[20].mxu1 %vm389_vm2, %v836_v59 }
 0x6f6   :  { %1463 = vmatpush3.bf16.msra.mxu1 %v1859_v22  ;;  %1464 = vmatprep.mubr.msk.bf16.mxu1 %vm1613_vm0, %v1612_v1 }
 0x6f7   :  { %1474 = vmatprep.subr.bf16.mxu1 %v1612_v1 }
 0x7c0   :  { %v777_v60 = vpop.f32.mrb[16].mxu1 }
 0x7c1   :  { %v1442_v61 = vpop.f32.mrb[17].mxu1 }
 0x7c2   :  { %v780_v62 = vpop.f32.mrb[18].mxu1 }
 0x7c3   :  { %v784_v63 = vpack.c.bf16 %v780_v62, %v777_v60  ;;  %v1443_v24 = vpop.f32.mrb[19].mxu1 }
 0x7c5   :  { %1447 = vmatmul.mubr.msk.bf16.vlgmr.msra.gmra.mrb[12].mxu0 %vm556_vm5, %v784_v63 }
 0x7c6   :  { %1457 = vmatpush3.bf16.xpose.msra.mxu0 %v1852_v15  ;;  %1458 = vmatprep.mubr.msk.bf16.mxu0 %vm1613_vm0, %v1612_v1 }
 0x7c7   :  { %1468 = vmatprep.subr.bf16.mxu0 %v1612_v1 }
 0x7c8   :  { %v874_v22 = vpop.f32.mrb[20].mxu1 }
 0x7c9   :  { %v1454_v0 = vpop.f32.mrb[21].mxu1 }
 0x7ca   :  { %v877_v2 = vpop.f32.mrb[22].mxu1 }
 0x7cb   :  { %v1455_v3 = vpop.f32.mrb[23].mxu1 }
 0x7cd   :  { %1459 = vmatmul.mubr.msk.bf16.vlgmr.msra.gmra.mrb[20].mxu0 %vm389_vm2, %v882_v6 }
 0x7ce   :  { %1470 = vmatprep.mubr.msk.bf16.mxu0 %vm1613_vm0, %v1612_v1  ;;  %1469 = vmatpush3.bf16.msra.mxu0 %v1002_v34 }
 0x7cf   :  { %1480 = vmatprep.subr.bf16.mxu0 %v1612_v1 }
 0x8a0   :  { %v920_v8 = vpop.f32.mrb[20].mxu0 }
 0x8a1   :  { %v921_v10 = vadd.f32 %v920_v8, %v874_v22  ;;  %v1460_v11 = vpop.f32.mrb[21].mxu0 }
 0x8a2   :  { %v923_v13 = vpop.f32.mrb[22].mxu0 }
 0x8a3   :  { %v924_v15 = vadd.f32 %v923_v13, %v877_v2  ;;  %v1461_v14 = vpop.f32.mrb[23].mxu0  ;;  %v927_v12 = vadd.f32 %v921_v10, %v1884_v35 }
 0x8a5   :  { %v929_v16 = vsel %vm486_vm3, %v927_v12, -inf  ;;  %v928_v17 = vadd.f32 %v924_v15, %v1889_v41 }
 0x8a6   :  { %930 = vmax.xlane.f32.xlu1 %v929_v16 }
 0x8a7   :  { %v932_v19 = vsel %vm486_vm3, %v928_v17, -inf }
 0x8a8   :  { %933 = vmax.xlane.f32.xlu0 %v932_v19 }
 0x933   :  { %v931_v20 = vpop.xlane.xlu1 %930 }
 0x934   :  { %v935_v21 = vsub.f32 %v927_v12, %v931_v20 }
 0x935   :  { %v934_v23 = vpop.xlane.xlu0 %933 }
 0x936   :  { %v937_v25 = vmul.f32 1.442695, %v935_v21  ;;  %v936_v26 = vsub.f32 %v928_v17, %v934_v23  ;;  %v1320_v23 = vld [vmem:[%s2060_s15] ss:$0 sm:$0xff]  ;;  %s1623_s15 = smov [#allocation3]  }
 0x937   :  { %s1282_s11 = sshll.u32 %s1623_s15, 4  ;;  %s1283_s11 = int_to_ptr.vmem [resolvable:$true] %s1282_s11 }
 0x938   :  { %1548 = vpow2.f32 %v937_v25  ;;  %v939_v27 = vmul.f32 1.442695, %v936_v26  ;;  %v381_v25 = vadd.f32 %v1320_v23, %v1733_v4  ;;  %v382_v26 = vadd.f32 %v1320_v23, %v1738_v5  ;;  %s1564_s12 = scalar_lea.vmem %s1283_s11, 256  ;;  %p1569_p1 = scmp.lt.s32.totalorder %s1283_s11, %s1283_s11 }
 0x939   :  { %p1565_p0 = scmp.ne.s32.totalorder %s1283_s11, %s1564_s12  ;;  %p1570_p2 = scmp.lt.s32.totalorder %s1564_s12, %s1564_s12 }
 0x93a   :  { %1550 = vpow2.f32 %v939_v27 }
 0x93b   :  { %p1571_p3 = por %p1570_p2, %p1569_p1 }
 0x93d   :  { %p1572_p4 = pnand %p1571_p3, %p1565_p0 }
 0x942   :  { %v1549_v28 = vpop.eup %1548 }
 0x943   :  { %v941_v29 = vsel %vm486_vm3, %v1549_v28, 0.0 }
 0x944   :  { %v1551_v30 = vpop.eup %1550  ;;  %942 = vadd.xlane.f32.xlu0 %v941_v29 }
 0x945   :  { %v944_v32 = vsel %vm486_vm3, %v1551_v30, 0.0 }
 0x946   :  { %945 = vadd.xlane.f32.xlu1 %v944_v32 }
 0x957   :  { %1093 = vrot.lane.b32.xlu1 %v1870_v31, %s1618_s6 }
 0x95a   :  { %1047 = vrot.lane.b32.xlu0 %v1843_v7, %s1622_s22 }
 0x9d1   :  { %v943_v36 = vpop.xlane.xlu0 %942 }
 0x9d2   :  { %1552 = vrcp.f32 %v943_v36 }
 0x9d3   :  { %v946_v37 = vpop.xlane.xlu1 %945 }
 0x9d4   :  { %1554 = vrcp.f32 %v946_v37 }
 0x9d5   :  { %v1048_v7 = vpop.permute.xlu0 %1047 }
 0x9d7   :  { %v1094_v51 = vpop.permute.xlu1 %1093 }
 0x9dc   :  { %v1553_v38 = vpop.eup %1552 }
 0x9dd   :  { %v949_v40 = vmul.f32 %v1553_v38, %v1549_v28 }
 0x9de   :  { %v1555_v39 = vpop.eup %1554 }
 0x9df   :  { %v950_v31 = vmul.f32 %v1555_v39, %v1551_v30 }
 0x9e1   :  { %v951_v42 = vpack.c.bf16 %v950_v31, %v949_v40 }
 0x9e3   :  { %1465 = vmatmul.mubr.msk.bf16.vlgmr.msra.gmra.mrb[24].mxu1 %vm486_vm3, %v951_v42 }
 0x9e4   :  { %1475 = vmatpush3.bf16.xpose.msra.mxu1 %v1908_v9  ;;  %1476 = vmatprep.mubr.msk.bf16.mxu1 %vm1613_vm0, %v1612_v1 }
 0x9e5   :  { %1486 = vmatprep.subr.bf16.mxu1 %v1612_v1 }
 0x9eb   :  { %1477 = vmatmul.mubr.msk.bf16.vlgmr.msra.gmra.mrb[28].mxu1 %vm389_vm2, %v1048_v7 }
 0x9ec   :  { %1487 = vmatpush3.bf16.msra.mxu1 %v1937_v45  ;;  %1488 = vmatprep.mubr.msk.bf16.mxu1 %vm1613_vm0, %v1612_v1 }
 0xab6   :  { %v989_v43 = vpop.f32.mrb[24].mxu1 }
 0xab7   :  { %v1466_v44 = vpop.f32.mrb[25].mxu1 }
 0xab8   :  { %v992_v46 = vpop.f32.mrb[26].mxu1 }
 0xab9   :  { %v996_v47 = vpack.c.bf16 %v992_v46, %v989_v43  ;;  %v1467_v48 = vpop.f32.mrb[27].mxu1 }
 0xabb   :  { %1471 = vmatmul.mubr.msk.bf16.vlgmr.msra.gmra.mrb[12].mxu0 %vm556_vm5, %v996_v47 }
 0xabc   :  { %1481 = vmatpush3.bf16.xpose.msra.mxu0 %v1919_v18  ;;  %1482 = vmatprep.mubr.msk.bf16.mxu0 %vm1613_vm0, %v1612_v1 }
 0xabd   :  { %1492 = vmatprep.subr.bf16.mxu0 %v1612_v1 }
 0xabe   :  { %v1086_v9 = vpop.f32.mrb[28].mxu1 }
 0xabf   :  { %v1478_v49 = vpop.f32.mrb[29].mxu1 }
 0xac0   :  { %v1089_v45 = vpop.f32.mrb[30].mxu1 }
 0xac1   :  { %v1479_v50 = vpop.f32.mrb[31].mxu1 }
 0xac3   :  { %1483 = vmatmul.mubr.msk.bf16.vlgmr.msra.gmra.mrb[24].mxu0 %vm389_vm2, %v1094_v51 }
 0xac4   :  { %1494 = vmatprep.mubr.msk.bf16.mxu0 %vm1613_vm0, %v1612_v1 }
 0xb96   :  { %v1132_v52 = vpop.f32.mrb[24].mxu0 }
 0xb97   :  { %v1133_v53 = vadd.f32 %v1132_v52, %v1086_v9  ;;  %v1484_v54 = vpop.f32.mrb[25].mxu0 }
 0xb98   :  { %v1135_v55 = vpop.f32.mrb[26].mxu0 }
 0xb99   :  { %v1136_v18 = vadd.f32 %v1135_v55, %v1089_v45  ;;  %v1485_v56 = vpop.f32.mrb[27].mxu0  ;;  %v1139_v57 = vadd.f32 %v1133_v53, %v1884_v35 }
 0xb9b   :  { %v1141_v58 = vsel %vm486_vm3, %v1139_v57, -inf  ;;  %v1140_v59 = vadd.f32 %v1136_v18, %v1889_v41  ;;  %v1209_v41 = vld [vmem:[%s2059_s14 + $0xc] sm:$0xf] }
 0xb9c   :  { %1142 = vmax.xlane.f32.xlu1 %v1141_v58  ;;  %v1214_v6 = vsel %vm560_vm4, %v1209_v41, 0 }
 0xb9d   :  { %v1144_v60 = vsel %vm486_vm3, %v1140_v59, -inf  ;;  %1493 = vmatpush3.bf16.msra.mxu0 %v1214_v6 }
 0xb9e   :  { %1145 = vmax.xlane.f32.xlu0 %v1144_v60 }
 0xc29   :  { %v1143_v61 = vpop.xlane.xlu1 %1142 }
 0xc2a   :  { %v1147_v62 = vsub.f32 %v1139_v57, %v1143_v61 }
 0xc2b   :  { %v1146_v63 = vpop.xlane.xlu0 %1145 }
 0xc2c   :  { %v1149_v1 = vmul.f32 1.442695, %v1147_v62  ;;  %v1148_v24 = vsub.f32 %v1140_v59, %v1146_v63 }
 0xc2e   :  { %1556 = vpow2.f32 %v1149_v1  ;;  %v1151_v22 = vmul.f32 1.442695, %v1148_v24 }
 0xc30   :  { %1558 = vpow2.f32 %v1151_v22 }
 0xc38   :  { %v1557_v0 = vpop.eup %1556 }
 0xc39   :  { %v1153_v2 = vsel %vm486_vm3, %v1557_v0, 0.0 }
 0xc3a   :  { %v1559_v35 = vpop.eup %1558  ;;  %1154 = vadd.xlane.f32.xlu0 %v1153_v2 }
 0xc3b   :  { %v1156_v3 = vsel %vm486_vm3, %v1559_v35, 0.0 }
 0xc3c   :  { %1157 = vadd.xlane.f32.xlu1 %v1156_v3 }
 0xcc7   :  { %v1155_v8 = vpop.xlane.xlu0 %1154 }
 0xcc8   :  { %1560 = vrcp.f32 %v1155_v8 }
 0xcc9   :  { %v1158_v10 = vpop.xlane.xlu1 %1157 }
 0xcca   :  { %1562 = vrcp.f32 %v1158_v10 }
 0xcd2   :  { %v1561_v11 = vpop.eup %1560 }
 0xcd3   :  { %v1161_v15 = vmul.f32 %v1561_v11, %v1557_v0 }
 0xcd4   :  { %v1563_v13 = vpop.eup %1562 }
 0xcd5   :  { %v1162_v14 = vmul.f32 %v1563_v13, %v1559_v35 }
 0xcd7   :  { %v1163_v12 = vpack.c.bf16 %v1162_v14, %v1161_v15 }
 0xcd9   :  { %1489 = vmatmul.mubr.msk.bf16.vlgmr.msra.gmra.mrb[32].mxu1 %vm486_vm3, %v1163_v12 }
 0xdac   :  { %v1201_v16 = vpop.f32.mrb[32].mxu1 }
 0xdad   :  { %v1490_v17 = vpop.f32.mrb[33].mxu1 }
 0xdae   :  { %v1204_v19 = vpop.f32.mrb[34].mxu1 }
 0xdaf   :  { %v1208_v20 = vpack.c.bf16 %v1204_v19, %v1201_v16  ;;  %v1491_v21 = vpop.f32.mrb[35].mxu1 }
 0xdb1   :  { %1495 = vmatmul.mubr.msk.bf16.vlgmr.msra.gmra.mrb[12].mxu0 %vm556_vm5, %v1208_v20 }
 0xe84   :  { %v1250_v27 = vpop.f32.mrb[12].mxu0 }
 0xe85   :  { %v1498_v28 = vadd.f32 %v1250_v27, %v381_v25  ;;  %v1496_v29 = vpop.f32.mrb[13].mxu0 }
 0xe86   :  { %v1253_v30 = vpop.f32.mrb[14].mxu0 }
 0xe87   :  { %1259 = vst.msk [vmem:[#allocation3] sm:$0xff] %vm98_vm1, %v1498_v28  ;;  %v1261_v32 = vmul.f32 %v1498_v28, %v1498_v28  ;;  %v1499_v33 = vadd.f32 %v1253_v30, %v382_v26  ;;  %v1497_v34 = vpop.f32.mrb[15].mxu0 }
 0xe89   :  { %1260 = vst.msk [vmem:[#allocation3 + $0x8] sm:$0xff] %vm98_vm1, %v1499_v33  ;;  %v1262_v36 = vmul.f32 %v1499_v33, %v1499_v33  ;;  %v1263_v37 = vsel %vm98_vm1, %v1261_v32, 0.0 }
 0xe8b   :  { %v1264_v38 = vsel %vm98_vm1, %v1262_v36, 0.0 }
 0xe8c   :  { %v1265_v39 = vadd.f32 %v1264_v38, %v1263_v37 }
 0xe8e   :  { %v1266_v4 = vrot.slane %v1265_v39, 4 }
 0xe90   :  { %v1267_v40 = vadd.f32 %v1266_v4, %v1265_v39 }
 0xe92   :  { %v1268_v5 = vrot.slane %v1267_v40, 2 }
 0xe94   :  { %v1269_v31 = vadd.f32 %v1268_v5, %v1267_v40 }
 0xe96   :  { %v1270_v42 = vrot.slane %v1269_v31, 1 }
 0xe98   :  { %v1271_v7 = vadd.f32 %v1270_v42, %v1269_v31 }
 0xe9a   :  { %v1272_v43 = vsel %vm98_vm1, %v1271_v7, 0.0 }
 0xe9b   :  { %1273 = vadd.xlane.f32.xlu0 %v1272_v43 }
 0xe9c   :  { %1575 = shalt.err (!%p1572_p4)
}
 0xe9d   :  { %s1576_s3 = scalar_lea.hbm %s2061_s16, 256 }
 0xe9e   :  { %p1577_p5 = scmp.ne.s32.totalorder %s2061_s16, %s1576_s3  ;;  %p1580_p6 = scmp.lt.u32.totalorder %s1576_s3, %s2061_s16 }
 0xea0   :  { %p1582_p7 = pnand %p1580_p6, %p1577_p5 }
 0xea2   :  { %1585 = shalt.err (!%p1582_p7)
}
 0xea3   :  { %s1624_s30 = smov 128   ;;  %s1625_s6 = smov [#allocation5]   ;;  %vm1275_vm6 = vcmask 0  }
 0xea4   :  { %1288 = dma.vmem_to_hbm [thread:$0]  %s1283_s11, 256, %s2061_s16, [#allocation4], %s1624_s30, %s1624_s30, %s1614_s29  }
 0xea5   :  { %s1295_s19 = sshll.u32 %s1625_s6, 4  ;;  %s1296_s19 = int_to_ptr.vmem [resolvable:$true] %s1295_s19 }
 0xea6   :  { %s1586_s7 = scalar_lea.vmem %s1296_s19, 16  ;;  %s1590_s5 = scalar_lea.vmem %s1296_s19, 32 }
 0xea7   :  { %p1587_p8 = scmp.ne.s32.totalorder %s1296_s19, %s1586_s7  ;;  %p1591_p9 = scmp.lt.s32.totalorder %s1296_s19, %s1296_s19 }
 0xea8   :  { %p1592_p10 = scmp.lt.s32.totalorder %s1590_s5, %s1586_s7 }
 0xeaa   :  { %p1593_p11 = por %p1592_p10, %p1591_p9 }
 0xeac   :  { %p1594_p12 = pnand %p1593_p11, %p1587_p8 }
 0xf28   :  { %v1274_v44 = vpop.xlane.xlu0 %1273 }
 0xf29   :  { %1276 = vst.msk [vmem:[#allocation5] sm:$0x1] %vm1275_vm6, %v1274_v44 }
 0xf2a   :  { %1597 = shalt.err (!%p1594_p12)
}
 0xf2b   :  { %s1598_s20 = scalar_lea.hbm %s2062_s17, 16 }
 0xf2c   :  { %p1599_p13 = scmp.ne.s32.totalorder %s2062_s17, %s1598_s20  ;;  %p1602_p0 = scmp.lt.u32.totalorder %s1598_s20, %s2062_s17 }
 0xf2e   :  { %p1604_p1 = pnand %p1602_p0, %p1599_p13 }
 0xf30   :  { %1607 = shalt.err (!%p1604_p1)
}
 0xf31   :  { %1298 = dma.vmem_to_hbm [thread:$0]  %s1296_s19, 16, %s2062_s17, [#allocation6]  }
 0xf32   :  { %1608 = dma.done.wait [#allocation4], 256  }
 0xf33   :  { %1609 = vsyncadd [#allocation4], 4294967040 }
 0xf34   :  { %1610 = dma.done.wait [#allocation6], 16  }
 0xf35   :  { %1611 = vsyncadd [#allocation6], 4294967280 }
 0xf36   :  { %1305 = vsyncpa [#allocation4], 1 }
 0xf37   :  { %1306 = vsyncpa [#allocation6], 1 }

</bundles_post_ra>
